<compile_context>
chip_gen: v5e
topology: v5e:2x2
jax: 0.10.0
libtpu: 0.0.40
codegen_flags: <defaults>
</compile_context>

<pallas_src>
import numpy as np
import jax
import jax.numpy as jnp
from jax import lax
from jax.experimental import pallas as pl
from jax.experimental.pallas import tpu as pltpu


# ------------------------------------------------------------------ config ---
D_POINTS = 3
D_NORMALS = 3
DIM_COND_EMBED = 8          # body-pose embedding size (zeroed for 'env_obj')
FEATURE_SIZE = 32           # opt.feature_vector_size
HIDDEN = 32                 # opt.dims = [32, 32]
D_OUT = 4                   # forced by EnvmapMaterialNetwork (opt.d_out = 4)
POSE_DIM = 16               # body_specs.pose_dim
NUM_LGT_SGS = 128
SPECULAR_ALBEDO = 0.02
D_IN = D_POINTS + D_NORMALS + DIM_COND_EMBED + FEATURE_SIZE   # 46
TM_MAX = 4096               # row tile: ~12.3 MiB of double-buffered f32 VMEM
                            # (lane-padded pts/nrm/feat + out), fits the 32 MiB
                            # scoped VMEM limit on v5e/v6e/v7x, and is large
                            # enough that the ~0.35us fixed grid-step overhead
                            # drops to a small fraction of each step.


# ------------------------------------------------ lgtSGs / init-time helpers ---
def compute_energy(lgtSGs):
    lgtLambda = jnp.abs(lgtSGs[:, 3:4])
    lgtMu = jnp.abs(lgtSGs[:, 4:])
    return lgtMu * 2.0 * np.pi / lgtLambda * (1.0 - jnp.exp(-2.0 * lgtLambda))


def fibonacci_sphere(samples=1):
    points = []
    phi = np.pi * (3.0 - np.sqrt(5.0))
    for i in range(samples):
        y = 1 - i / float(samples - 1) * 2
        radius = np.sqrt(1 - y * y)
        theta = phi * i
        x = np.cos(theta) * radius
        z = np.sin(theta) * radius
        points.append([x, y, z])
    return np.array(points)


def init_lgt_sgs(key, num_lgt_sgs):
    lgt = jax.random.normal(key, (num_lgt_sgs, 7), dtype=jnp.float32)
    # last two mu channels copy channel 4
    lgt = lgt.at[:, 5:7].set(jnp.broadcast_to(lgt[:, 4:5], (num_lgt_sgs, 2)))
    # sharpness
    lgt = lgt.at[:, 3:4].set(10.0 + jnp.abs(lgt[:, 3:4] * 20.0))
    # normalize energy
    energy = compute_energy(lgt)
    lgt = lgt.at[:, 4:].set(
        jnp.abs(lgt[:, 4:]) / jnp.sum(energy, axis=0, keepdims=True)
        * 2.0 * np.pi * 0.8)
    # fibonacci lobes (duplicated over the two halves)
    lobes = jnp.asarray(fibonacci_sphere(num_lgt_sgs // 2), dtype=jnp.float32)
    lgt = lgt.at[:num_lgt_sgs // 2, :3].set(lobes)
    lgt = lgt.at[num_lgt_sgs // 2:, :3].set(lobes)
    return lgt


def init_mlp_params(key):
    """3-layer MLP of RenderingNet: [D_IN, HIDDEN, HIDDEN, D_OUT]."""
    # TODO(synk): the real checkpoints wrap these Linears in weight_norm; fold
    # the (g, v) reparameterization into w before passing params here.
    dims = [D_IN, HIDDEN, HIDDEN, D_OUT]
    params = []
    for l in range(len(dims) - 1):
        key, kw, kb = jax.random.split(key, 3)
        bound = 1.0 / np.sqrt(dims[l])
        w = jax.random.uniform(kw, (dims[l], dims[l + 1]), jnp.float32,
                               -bound, bound)
        b = jax.random.uniform(kb, (1, dims[l + 1]), jnp.float32,
                               -bound, bound)
        params.append((w, b))
    return params


# ------------------------------------------------------------ Pallas kernel ---
def brdf_mlp_kernel(pts_ref, nrm_ref, feat_ref,
                    w0p_ref, w0n_ref, w0f_ref, b0_ref,
                    w1_ref, b1_ref, w2t_ref, b2t_ref,
                    scale_ref, off_ref,
                    out_ref):
    # f32 row streams are read straight from HBM exactly once (no wrapper
    # cast/pad pass, no in-kernel casts); the dots accumulate in f32.
    pts = pts_ref[...]                            # (TM, 3)
    nrm = nrm_ref[...]                            # (TM, 3)
    feat = feat_ref[...]                          # (TM, 32)

    # Layer 0 split into three dots == concat([pts, nrm, 0, feat]) @ w0 + b0.
    # The pose-embedding rows of w0 multiply zeros (render_mode='env_obj'),
    # so they are never loaded.
    h = (jnp.dot(pts, w0p_ref[...], preferred_element_type=jnp.float32)
         + jnp.dot(nrm, w0n_ref[...], preferred_element_type=jnp.float32)
         + jnp.dot(feat, w0f_ref[...], preferred_element_type=jnp.float32)
         + b0_ref[...])
    h = jnp.maximum(h, 0.0)                       # ReLU
    # Layer 1
    h = jnp.dot(h, w1_ref[...], preferred_element_type=jnp.float32) + b1_ref[...]
    h = jnp.maximum(h, 0.0)                       # ReLU
    # Layer 2 computed transposed so the single output store is lane-dense
    # (rows ride the 128-lane axis -> unmasked vst).  dot_general contracts
    # h's feature axis directly (trans_b form) instead of materializing h.T,
    # avoiding an XLU relayout per grid step.
    o_t = lax.dot_general(w2t_ref[...], h, (((1,), (1,)), ((), ())),
                          preferred_element_type=jnp.float32) + b2t_ref[...]
    o_t = jax.nn.sigmoid(o_t)                     # (4, TM)
    # sg_roughness affine (brdf[:, 3] * 0.9 + 0.09) applied as one FMA via a
    # per-output-row (4,1) scale=[1,1,1,0.9] / offset=[0,0,0,0.09].
    out_ref[...] = o_t * scale_ref[...] + off_ref[...]


def _round_up(x, m):
    return (x + m - 1) // m * m


def _num_tensorcores():
    """Best-effort TensorCores-per-chip (2 on v7x, 1 on v5e/v6e)."""
    try:
        info = pltpu.get_tpu_info()
        for attr in ("num_cores", "core_count", "tensorcore_count",
                     "num_tensorcores"):
            v = getattr(info, attr, None)
            if isinstance(v, int) and v > 0:
                return v
    except Exception:
        pass
    return 1


def _row_tile(n, num_cores):
    """Row tile: multiple of 128 (keeps the transposed output block lane-
    aligned and the input sublanes 8-aligned), capped at TM_MAX.  The forced
    >=2-grid-step split is applied ONLY when the chip has >1 TensorCore
    (v7x megacore); on single-core v5e/v6e it would be pure step overhead."""
    n128 = _round_up(n, 128)
    tm = min(TM_MAX, n128)
    if num_cores > 1 and pl.cdiv(n128, tm) < 2 and n128 >= 256:
        tm = _round_up(pl.cdiv(n128, 2), 128)
    return tm


def brdf_mlp_pallas(pts, nrm, feat, params):
    """pts/nrm: (N, 3), feat: (N, 32) -> (roughness (N,1), diffuse_albedo (N,3))."""
    N = pts.shape[0]
    (w0, b0), (w1, b1), (w2, b2) = params
    # render_mode='env_obj': the pose-embedding input is all-zero, so rows
    # [6, 6+DIM_COND_EMBED) of w0 never contribute and are dropped.
    w0p = w0[:D_POINTS]                                       # (3, 32)
    w0n = w0[D_POINTS:D_POINTS + D_NORMALS]                   # (3, 32)
    w0f = w0[D_POINTS + D_NORMALS + DIM_COND_EMBED:]          # (32, 32)
    w2t = w2.T                                                # (4, 32)
    b2t = b2.T                                                # (4, 1)
    # Post-sigmoid epilogue constants (identity on the 3 albedo rows,
    # 0.9*x + 0.09 on the roughness row) -> one FMA, no iota/compare/select.
    scale = jnp.array([[1.0], [1.0], [1.0], [0.9]], jnp.float32)
    offset = jnp.array([[0.0], [0.0], [0.0], [0.09]], jnp.float32)

    tm = _row_tile(N, _num_tensorcores())
    grid = pl.cdiv(N, tm)
    # No wrapper-side cast or jnp.pad: any remainder tile is handled by the
    # Pallas pipeline itself (overhanging reads are padded, overhanging
    # writes are dropped), so each row stream is read from HBM exactly once.
    # TODO(synk): if the producer can emit points+normals as a single (N, 6)
    # stream (and/or bf16 rows), the two narrow lane-padded DMAs merge and the
    # dominant HBM read shrinks further.

    # Grid-invariant weight/bias blocks: the constant index_map means the
    # pipeline fetches them once and keeps them resident across grid steps.
    full = lambda a: pl.BlockSpec(a.shape, lambda i: (0, 0))
    out_t = pl.pallas_call(
        brdf_mlp_kernel,
        out_shape=jax.ShapeDtypeStruct((D_OUT, N), jnp.float32),
        grid=(grid,),
        in_specs=[
            pl.BlockSpec((tm, D_POINTS), lambda i: (i, 0)),
            pl.BlockSpec((tm, D_NORMALS), lambda i: (i, 0)),
            pl.BlockSpec((tm, FEATURE_SIZE), lambda i: (i, 0)),
            full(w0p), full(w0n), full(w0f), full(b0),
            full(w1), full(b1), full(w2t), full(b2t),
            full(scale), full(offset),
        ],
        out_specs=pl.BlockSpec((D_OUT, tm), lambda i: (0, i)),
        compiler_params=pltpu.CompilerParams(
            dimension_semantics=("parallel",),
            vmem_limit_bytes=32 * 1024 * 1024),
    )(pts, nrm, feat, w0p, w0n, w0f, b0, w1, b1, w2t, b2t, scale, offset)

    roughness = out_t[D_OUT - 1:, :].T       # (N, 1), affine already applied
    diffuse_albedo = out_t[:3, :].T          # (N, 3)
    return roughness, diffuse_albedo


# -------------------------------------------------------------- forward glue ---
def envmap_material_forward(points, normals, view_dirs, body_pose,
                            feature_vectors, params, lgt_sgs,
                            specular_reflectance):
    """Mirrors EnvmapMaterialNetwork.forward with mode='pose',
    render_mode='env_obj' (pose embedding is zeroed), upper_hemi=False."""
    del view_dirs  # unused in 'pose' mode
    num_images = body_pose.shape[0]
    pts = points.reshape(num_images, -1, D_POINTS)
    num_points = pts.shape[1]
    pts = pts.reshape(num_images * num_points, D_POINTS)
    # render_mode == 'env_obj': the body-pose embedding is replaced by zeros
    # in the reference, so it is never materialized; its w0 rows are dropped
    # inside brdf_mlp_pallas.  (lin_pose output is discarded in this mode.)
    roughness, diffuse_albedo = brdf_mlp_pallas(pts, normals,
                                                feature_vectors, params)

    lobe_directions = lgt_sgs[:, :3]
    lobe_width = lgt_sgs[:, 3:4]
    lobe_intensity = lgt_sgs[:, 4:]
    lgt_out = jnp.concatenate(
        [lobe_directions, lobe_width, lobe_intensity], axis=-1)

    return {
        "sg_lgtSGs": lgt_out,
        "sg_specular_reflectance": specular_reflectance,
        "sg_roughness": roughness,
        "sg_diffuse_albedo": diffuse_albedo,
    }


# ----------------------------------------------------------------------- main ---
if __name__ == "__main__":
    key = jax.random.PRNGKey(0)
    k_lgt, k_mlp, k_pts, k_nrm, k_vd, k_pose, k_feat = jax.random.split(key, 7)

    B, P = 2, 128                       # num_images, points per image -> N=256
    N = B * P

    lgt_sgs = init_lgt_sgs(k_lgt, NUM_LGT_SGS)                    # (128, 7)
    mlp_params = init_mlp_params(k_mlp)
    specular_reflectance = jnp.full((1, 1), SPECULAR_ALBEDO, jnp.float32)
    # TODO(synk): lin_pose (pose_dim->8) weights exist in the module but its
    # output is discarded for render_mode='env_obj', so it is not materialized.

    points = jax.random.normal(k_pts, (B, P, D_POINTS), jnp.float32)
    normals = jax.random.normal(k_nrm, (N, D_NORMALS), jnp.float32)
    view_dirs = jax.random.normal(k_vd, (N, 3), jnp.float32)      # unused
    body_pose = jax.random.normal(k_pose, (B, POSE_DIM), jnp.float32)
    feature_vectors = jax.random.normal(k_feat, (N, FEATURE_SIZE), jnp.float32)

    fwd = jax.jit(envmap_material_forward)
    out = fwd(points, normals, view_dirs, body_pose, feature_vectors,
              mlp_params, lgt_sgs, specular_reflectance)
    jax.block_until_ready(out)

    assert out["sg_lgtSGs"].shape == (NUM_LGT_SGS, 7)
    assert out["sg_specular_reflectance"].shape == (1, 1)
    assert out["sg_roughness"].shape == (N, 1)
    assert out["sg_diffuse_albedo"].shape == (N, 3)
    assert bool(jnp.all(jnp.isfinite(out["sg_roughness"])))
    assert bool(jnp.all(jnp.isfinite(out["sg_diffuse_albedo"])))
    assert bool(jnp.all(out["sg_roughness"] >= 0.09))
    assert bool(jnp.all(out["sg_roughness"] <= 0.99))
    print("KERNEL_OK")
</pallas_src>

<mosaic_0001>
module attributes {stable_mosaic.version = 11 : i64} {
  func.func @brdf_mlp_kernel(%arg0: i32, %arg1: memref<256x3xf32, #tpu.memory_space<vmem>>, %arg2: memref<256x3xf32, #tpu.memory_space<vmem>>, %arg3: memref<256x32xf32, #tpu.memory_space<vmem>>, %arg4: memref<3x32xf32, #tpu.memory_space<vmem>>, %arg5: memref<3x32xf32, #tpu.memory_space<vmem>>, %arg6: memref<32x32xf32, #tpu.memory_space<vmem>>, %arg7: memref<1x32xf32, #tpu.memory_space<vmem>>, %arg8: memref<32x32xf32, #tpu.memory_space<vmem>>, %arg9: memref<1x32xf32, #tpu.memory_space<vmem>>, %arg10: memref<4x32xf32, #tpu.memory_space<vmem>>, %arg11: memref<4x1xf32, #tpu.memory_space<vmem>>, %arg12: memref<4x1xf32, #tpu.memory_space<vmem>>, %arg13: memref<4x1xf32, #tpu.memory_space<vmem>>, %arg14: memref<4x256xf32, #tpu.memory_space<vmem>>) attributes {dimension_semantics = [#tpu.dimension_semantics<parallel>], iteration_bounds = array<i64: 1>, scalar_prefetch = 0 : i64, scratch_operands = 0 : i64, tpu.core_type = #tpu.core_type<tc>, window_params = [{transform_indices = @transform_0, window_bounds = array<i64: 256, 3>}, {transform_indices = @transform_1, window_bounds = array<i64: 256, 3>}, {transform_indices = @transform_2, window_bounds = array<i64: 256, 32>}, {pipeline_mode = #tpu.pipeline_mode<synchronous>, transform_indices = @transform_3, window_bounds = array<i64: 3, 32>}, {pipeline_mode = #tpu.pipeline_mode<synchronous>, transform_indices = @transform_4, window_bounds = array<i64: 3, 32>}, {pipeline_mode = #tpu.pipeline_mode<synchronous>, transform_indices = @transform_5, window_bounds = array<i64: 32, 32>}, {pipeline_mode = #tpu.pipeline_mode<synchronous>, transform_indices = @transform_6, window_bounds = array<i64: 1, 32>}, {pipeline_mode = #tpu.pipeline_mode<synchronous>, transform_indices = @transform_7, window_bounds = array<i64: 32, 32>}, {pipeline_mode = #tpu.pipeline_mode<synchronous>, transform_indices = @transform_8, window_bounds = array<i64: 1, 32>}, {pipeline_mode = #tpu.pipeline_mode<synchronous>, transform_indices = @transform_9, window_bounds = array<i64: 4, 32>}, {pipeline_mode = #tpu.pipeline_mode<synchronous>, transform_indices = @transform_10, window_bounds = array<i64: 4, 1>}, {pipeline_mode = #tpu.pipeline_mode<synchronous>, transform_indices = @transform_11, window_bounds = array<i64: 4, 1>}, {pipeline_mode = #tpu.pipeline_mode<synchronous>, transform_indices = @transform_12, window_bounds = array<i64: 4, 1>}, {transform_indices = @transform_13, window_bounds = array<i64: 4, 256>}]} {
    %c0 = arith.constant 0 : index
    %c0_0 = arith.constant 0 : index
    %0 = vector.load %arg1[%c0, %c0_0] : memref<256x3xf32, #tpu.memory_space<vmem>>, vector<256x3xf32>
    %c0_1 = arith.constant 0 : index
    %c0_2 = arith.constant 0 : index
    %1 = vector.load %arg2[%c0_1, %c0_2] : memref<256x3xf32, #tpu.memory_space<vmem>>, vector<256x3xf32>
    %c0_3 = arith.constant 0 : index
    %c0_4 = arith.constant 0 : index
    %2 = vector.load %arg3[%c0_3, %c0_4] : memref<256x32xf32, #tpu.memory_space<vmem>>, vector<256x32xf32>
    %c0_5 = arith.constant 0 : index
    %c0_6 = arith.constant 0 : index
    %3 = vector.load %arg4[%c0_5, %c0_6] : memref<3x32xf32, #tpu.memory_space<vmem>>, vector<3x32xf32>
    %cst = arith.constant dense<0.000000e+00> : vector<256x32xf32>
    %4 = tpu.matmul %0, %3, %cst {dimension_numbers = #tpu.dot_dimension_numbers<[1], [0], [0], [1], [0, 0, 1, 1], [], []>} : vector<256x3xf32>, vector<3x32xf32>, vector<256x32xf32> -> vector<256x32xf32>
    %c0_7 = arith.constant 0 : index
    %c0_8 = arith.constant 0 : index
    %5 = vector.load %arg5[%c0_7, %c0_8] : memref<3x32xf32, #tpu.memory_space<vmem>>, vector<3x32xf32>
    %cst_9 = arith.constant dense<0.000000e+00> : vector<256x32xf32>
    %6 = tpu.matmul %1, %5, %cst_9 {dimension_numbers = #tpu.dot_dimension_numbers<[1], [0], [0], [1], [0, 0, 1, 1], [], []>} : vector<256x3xf32>, vector<3x32xf32>, vector<256x32xf32> -> vector<256x32xf32>
    %7 = arith.addf %4, %6 : vector<256x32xf32>
    %c0_10 = arith.constant 0 : index
    %c0_11 = arith.constant 0 : index
    %8 = vector.load %arg6[%c0_10, %c0_11] : memref<32x32xf32, #tpu.memory_space<vmem>>, vector<32x32xf32>
    %cst_12 = arith.constant dense<0.000000e+00> : vector<256x32xf32>
    %9 = tpu.matmul %2, %8, %cst_12 {dimension_numbers = #tpu.dot_dimension_numbers<[1], [0], [0], [1], [0, 0, 1, 1], [], []>} : vector<256x32xf32>, vector<32x32xf32>, vector<256x32xf32> -> vector<256x32xf32>
    %10 = arith.addf %7, %9 : vector<256x32xf32>
    %c0_13 = arith.constant 0 : index
    %c0_14 = arith.constant 0 : index
    %11 = vector.load %arg7[%c0_13, %c0_14] : memref<1x32xf32, #tpu.memory_space<vmem>>, vector<1x32xf32>
    %12 = vector.broadcast %11 : vector<1x32xf32> to vector<256x32xf32>
    %13 = arith.addf %10, %12 : vector<256x32xf32>
    %cst_15 = arith.constant 0.000000e+00 : f32
    %14 = vector.broadcast %cst_15 : f32 to vector<256x32xf32>
    %15 = arith.maximumf %13, %14 : vector<256x32xf32>
    %c0_16 = arith.constant 0 : index
    %c0_17 = arith.constant 0 : index
    %16 = vector.load %arg8[%c0_16, %c0_17] : memref<32x32xf32, #tpu.memory_space<vmem>>, vector<32x32xf32>
    %cst_18 = arith.constant dense<0.000000e+00> : vector<256x32xf32>
    %17 = tpu.matmul %15, %16, %cst_18 {dimension_numbers = #tpu.dot_dimension_numbers<[1], [0], [0], [1], [0, 0, 1, 1], [], []>} : vector<256x32xf32>, vector<32x32xf32>, vector<256x32xf32> -> vector<256x32xf32>
    %c0_19 = arith.constant 0 : index
    %c0_20 = arith.constant 0 : index
    %18 = vector.load %arg9[%c0_19, %c0_20] : memref<1x32xf32, #tpu.memory_space<vmem>>, vector<1x32xf32>
    %19 = vector.broadcast %18 : vector<1x32xf32> to vector<256x32xf32>
    %20 = arith.addf %17, %19 : vector<256x32xf32>
    %cst_21 = arith.constant 0.000000e+00 : f32
    %21 = vector.broadcast %cst_21 : f32 to vector<256x32xf32>
    %22 = arith.maximumf %20, %21 : vector<256x32xf32>
    %c0_22 = arith.constant 0 : index
    %c0_23 = arith.constant 0 : index
    %23 = vector.load %arg10[%c0_22, %c0_23] : memref<4x32xf32, #tpu.memory_space<vmem>>, vector<4x32xf32>
    %cst_24 = arith.constant dense<0.000000e+00> : vector<4x256xf32>
    %24 = tpu.matmul %23, %22, %cst_24 {dimension_numbers = #tpu.dot_dimension_numbers<[1], [1], [0], [0], [0, 0, 1, 0], [], []>} : vector<4x32xf32>, vector<256x32xf32>, vector<4x256xf32> -> vector<4x256xf32>
    %c0_25 = arith.constant 0 : index
    %c0_26 = arith.constant 0 : index
    %25 = vector.load %arg11[%c0_25, %c0_26] : memref<4x1xf32, #tpu.memory_space<vmem>>, vector<4x1xf32>
    %26 = vector.broadcast %25 : vector<4x1xf32> to vector<4x256xf32>
    %27 = arith.addf %24, %26 : vector<4x256xf32>
    %28 = arith.negf %27 : vector<4x256xf32>
    %29 = math.exp %28 : vector<4x256xf32>
    %cst_27 = arith.constant 1.000000e+00 : f32
    %30 = vector.broadcast %cst_27 : f32 to vector<4x256xf32>
    %31 = arith.addf %30, %29 : vector<4x256xf32>
    %32 = arith.divf %30, %31 : vector<4x256xf32>
    %c0_28 = arith.constant 0 : index
    %c0_29 = arith.constant 0 : index
    %33 = vector.load %arg12[%c0_28, %c0_29] : memref<4x1xf32, #tpu.memory_space<vmem>>, vector<4x1xf32>
    %34 = vector.broadcast %33 : vector<4x1xf32> to vector<4x256xf32>
    %35 = arith.mulf %32, %34 : vector<4x256xf32>
    %c0_30 = arith.constant 0 : index
    %c0_31 = arith.constant 0 : index
    %36 = vector.load %arg13[%c0_30, %c0_31] : memref<4x1xf32, #tpu.memory_space<vmem>>, vector<4x1xf32>
    %37 = vector.broadcast %36 : vector<4x1xf32> to vector<4x256xf32>
    %38 = arith.addf %35, %37 : vector<4x256xf32>
    %c0_32 = arith.constant 0 : index
    %c0_33 = arith.constant 0 : index
    %39 = vector.load %arg14[%c0_32, %c0_33] : memref<4x256xf32, #tpu.memory_space<vmem>>, vector<4x256xf32>
    tpu.vector_store %arg14[%c0_32, %c0_33], %38 {strides = array<i32>} : memref<4x256xf32, #tpu.memory_space<vmem>>, vector<4x256xf32>,
    return
  }
  func.func @transform_0(%arg0: i32) -> (i32, i32) {
    %c0_i32 = arith.constant 0 : i32
    %c0_i32_0 = arith.constant 0 : i32
    return %arg0, %c0_i32 : i32, i32
  }
  func.func @transform_1(%arg0: i32) -> (i32, i32) {
    %c0_i32 = arith.constant 0 : i32
    %c0_i32_0 = arith.constant 0 : i32
    return %arg0, %c0_i32 : i32, i32
  }
  func.func @transform_2(%arg0: i32) -> (i32, i32) {
    %c0_i32 = arith.constant 0 : i32
    %c0_i32_0 = arith.constant 0 : i32
    return %arg0, %c0_i32 : i32, i32
  }
  func.func @transform_3(%arg0: i32) -> (i32, i32) {
    %c0_i32 = arith.constant 0 : i32
    %c0_i32_0 = arith.constant 0 : i32
    %c0_i32_1 = arith.constant 0 : i32
    return %c0_i32, %c0_i32_0 : i32, i32
  }
  func.func @transform_4(%arg0: i32) -> (i32, i32) {
    %c0_i32 = arith.constant 0 : i32
    %c0_i32_0 = arith.constant 0 : i32
    %c0_i32_1 = arith.constant 0 : i32
    return %c0_i32, %c0_i32_0 : i32, i32
  }
  func.func @transform_5(%arg0: i32) -> (i32, i32) {
    %c0_i32 = arith.constant 0 : i32
    %c0_i32_0 = arith.constant 0 : i32
    %c0_i32_1 = arith.constant 0 : i32
    return %c0_i32, %c0_i32_0 : i32, i32
  }
  func.func @transform_6(%arg0: i32) -> (i32, i32) {
    %c0_i32 = arith.constant 0 : i32
    %c0_i32_0 = arith.constant 0 : i32
    %c0_i32_1 = arith.constant 0 : i32
    return %c0_i32, %c0_i32_0 : i32, i32
  }
  func.func @transform_7(%arg0: i32) -> (i32, i32) {
    %c0_i32 = arith.constant 0 : i32
    %c0_i32_0 = arith.constant 0 : i32
    %c0_i32_1 = arith.constant 0 : i32
    return %c0_i32, %c0_i32_0 : i32, i32
  }
  func.func @transform_8(%arg0: i32) -> (i32, i32) {
    %c0_i32 = arith.constant 0 : i32
    %c0_i32_0 = arith.constant 0 : i32
    %c0_i32_1 = arith.constant 0 : i32
    return %c0_i32, %c0_i32_0 : i32, i32
  }
  func.func @transform_9(%arg0: i32) -> (i32, i32) {
    %c0_i32 = arith.constant 0 : i32
    %c0_i32_0 = arith.constant 0 : i32
    %c0_i32_1 = arith.constant 0 : i32
    return %c0_i32, %c0_i32_0 : i32, i32
  }
  func.func @transform_10(%arg0: i32) -> (i32, i32) {
    %c0_i32 = arith.constant 0 : i32
    %c0_i32_0 = arith.constant 0 : i32
    %c0_i32_1 = arith.constant 0 : i32
    return %c0_i32, %c0_i32_0 : i32, i32
  }
  func.func @transform_11(%arg0: i32) -> (i32, i32) {
    %c0_i32 = arith.constant 0 : i32
    %c0_i32_0 = arith.constant 0 : i32
    %c0_i32_1 = arith.constant 0 : i32
    return %c0_i32, %c0_i32_0 : i32, i32
  }
  func.func @transform_12(%arg0: i32) -> (i32, i32) {
    %c0_i32 = arith.constant 0 : i32
    %c0_i32_0 = arith.constant 0 : i32
    %c0_i32_1 = arith.constant 0 : i32
    return %c0_i32, %c0_i32_0 : i32, i32
  }
  func.func @transform_13(%arg0: i32) -> (i32, i32) {
    %c0_i32 = arith.constant 0 : i32
    %c0_i32_0 = arith.constant 0 : i32
    return %c0_i32, %arg0 : i32, i32
  }
}

</mosaic_0001>

<bundles_post_ra>
// kernel: envmap_material_forward.1
= control target key start
LH: loop header
LB: loop body
LE: loop exit
PB: predicated region body
PF: predicated region fallthrough
CT: control target
= control target key end

     0   :  { %vm239_vm0 = vcmask 1042432   ;;  %vm142_vm1 = vcmask 23552   ;;  %vm572_vm2 = vcmask 261120   ;;  %vm1334_vm11 = vcmask 1043456   ;;  %s2211_s5 = inlined_call_operand.vmem [shape: f32[32,32], index: 5, kind: input, shape index: {}]   ;;  %s2212_s4 = inlined_call_operand.vmem [shape: f32[3,32], index: 4, kind: input, shape index: {}]   ;;  %s2213_s3 = inlined_call_operand.vmem [shape: f32[3,32], index: 3, kind: input, shape index: {}]   ;;  %s2214_s1 = inlined_call_operand.vmem [shape: f32[256,3], index: 1, kind: input, shape index: {}]   ;;  %s2215_s0 = inlined_call_operand.vmem [shape: f32[256,3], index: 0, kind: input, shape index: {}]   ;;  %s2216_s2 = inlined_call_operand.vmem [shape: f32[256,32], index: 2, kind: input, shape index: {}]   ;;  %s2217_s6 = inlined_call_operand.vmem [shape: f32[1,32], index: 6, kind: input, shape index: {}]   ;;  %s2218_s7 = inlined_call_operand.vmem [shape: f32[32,32], index: 7, kind: input, shape index: {}]   ;;  %s2219_s8 = inlined_call_operand.vmem [shape: f32[1,32], index: 8, kind: input, shape index: {}]   ;;  %s2220_s9 = inlined_call_operand.vmem [shape: f32[4,32], index: 9, kind: input, shape index: {}]   ;;  %s2221_s10 = inlined_call_operand.vmem [shape: f32[4,1], index: 10, kind: input, shape index: {}]   ;;  %s2222_s11 = inlined_call_operand.vmem [shape: f32[4,1], index: 11, kind: input, shape index: {}]   ;;  %s2223_s12 = inlined_call_operand.vmem [shape: f32[4,1], index: 12, kind: input, shape index: {}]   ;;  %s2224_s13 = inlined_call_operand.vmem [shape: f32[4,256], index: 13, kind: output, shape index: {}]  }
   0x1   :  { %v571_v0 = vld [vmem:[%s2211_s5 + $0x18] sm:$0xff]  ;;  %v570_v1 = vld [vmem:[%s2211_s5 + $0x10] sm:$0xff]  ;;  %v569_v2 = vld [vmem:[%s2211_s5 + $0x8] sm:$0xff] }
   0x2   :  { %681 = vmatpush.msra.mxu2 %v571_v0  ;;  %v141_v3 = vld [vmem:[%s2212_s4] sm:$0x7]  ;;  %v77_v9 = vld [vmem:[%s2214_s1 + $0x8] sm:$0xff]  ;;  %v78_v12 = vld [vmem:[%s2214_s1 + $0x10] sm:$0xff] }
   0x3   :  { %1342 = vmatpush.msk.msra.mxu0 %vm239_vm0, %v141_v3  ;;  %v140_v4 = vld [vmem:[%s2213_s3] sm:$0x7]  ;;  %v45_v10 = vld [vmem:[%s2215_s0 + $0x8] sm:$0xff]  ;;  %v46_v13 = vld [vmem:[%s2215_s0 + $0x10] sm:$0xff] }
   0x4   :  { %v76_v5 = vld [vmem:[%s2214_s1] sm:$0xff]  ;;  %682 = vmatpush.msra.mxu2 %v570_v1  ;;  %1375 = vmatpush.msk.msra.mxu1 %vm239_vm0, %v140_v4  ;;  %v109_v11 = vld [vmem:[%s2216_s2 + $0x8] sm:$0xff]  ;;  %v110_v14 = vld [vmem:[%s2216_s2 + $0x10] sm:$0xff] }
   0x5   :  { %v44_v6 = vld [vmem:[%s2215_s0] sm:$0xff]  ;;  %1343 = vmatmul.msk.f32.vlgmr.msra.gmra.mxu0 %vm142_vm1, %v76_v5  ;;  %v79_v15 = vld [vmem:[%s2214_s1 + $0x18] sm:$0xff]  ;;  %v81_v21 = vld [vmem:[%s2214_s1 + $0x28] sm:$0xff] }
   0x6   :  { %v568_v7 = vld [vmem:[%s2211_s5] sm:$0xff]  ;;  %1376 = vmatmul.msk.f32.vlgmr.msra.gmra.mxu1 %vm142_vm1, %v44_v6  ;;  %683 = vmatpush.msra.mxu2 %v569_v2  ;;  %v47_v16 = vld [vmem:[%s2215_s0 + $0x18] sm:$0xff]  ;;  %v49_v22 = vld [vmem:[%s2215_s0 + $0x28] sm:$0xff] }
   0x7   :  { %v108_v8 = vld [vmem:[%s2216_s2] sm:$0xff]  ;;  %v111_v17 = vld [vmem:[%s2216_s2 + $0x18] sm:$0xff]  ;;  %v113_v23 = vld [vmem:[%s2216_s2 + $0x28] sm:$0xff] }
   0x8   :  { %684 = vmatpush.msra.mxu2 %v568_v7  ;;  %v80_v18 = vld [vmem:[%s2214_s1 + $0x20] sm:$0xff]  ;;  %v82_v24 = vld [vmem:[%s2214_s1 + $0x30] sm:$0xff]  ;;  %v83_v27 = vld [vmem:[%s2214_s1 + $0x38] sm:$0xff] }
   0x9   :  { %1408 = vmatmul.msk.f32.vlgmr.msra.gmra.mxu2 %vm572_vm2, %v108_v8  ;;  %v48_v19 = vld [vmem:[%s2215_s0 + $0x20] sm:$0xff]  ;;  %v50_v25 = vld [vmem:[%s2215_s0 + $0x30] sm:$0xff]  ;;  %v51_v28 = vld [vmem:[%s2215_s0 + $0x38] sm:$0xff] }
   0xa   :  { %v112_v20 = vld [vmem:[%s2216_s2 + $0x20] sm:$0xff]  ;;  %v114_v26 = vld [vmem:[%s2216_s2 + $0x30] sm:$0xff]  ;;  %v115_v29 = vld [vmem:[%s2216_s2 + $0x38] sm:$0xff] }
   0xb   :  { %v84_v30 = vld [vmem:[%s2214_s1 + $0x40] sm:$0xff]  ;;  %v85_v33 = vld [vmem:[%s2214_s1 + $0x48] sm:$0xff]  ;;  %v86_v36 = vld [vmem:[%s2214_s1 + $0x50] sm:$0xff] }
   0xc   :  { %v52_v31 = vld [vmem:[%s2215_s0 + $0x40] sm:$0xff]  ;;  %v53_v34 = vld [vmem:[%s2215_s0 + $0x48] sm:$0xff]  ;;  %v54_v37 = vld [vmem:[%s2215_s0 + $0x50] sm:$0xff] }
   0xd   :  { %1344 = vmatmul.msk.f32.gmra.mxu0 %vm142_vm1, %v77_v9  ;;  %v116_v32 = vld [vmem:[%s2216_s2 + $0x40] sm:$0xff]  ;;  %v117_v35 = vld [vmem:[%s2216_s2 + $0x48] sm:$0xff]  ;;  %v118_v38 = vld [vmem:[%s2216_s2 + $0x50] sm:$0xff] }
   0xe   :  { %1377 = vmatmul.msk.f32.gmra.mxu1 %vm142_vm1, %v45_v10  ;;  %v87_v39 = vld [vmem:[%s2214_s1 + $0x58] sm:$0xff]  ;;  %v88_v42 = vld [vmem:[%s2214_s1 + $0x60] sm:$0xff]  ;;  %v89_v45 = vld [vmem:[%s2214_s1 + $0x68] sm:$0xff] }
   0xf   :  { %v55_v40 = vld [vmem:[%s2215_s0 + $0x58] sm:$0xff]  ;;  %v56_v43 = vld [vmem:[%s2215_s0 + $0x60] sm:$0xff]  ;;  %v57_v46 = vld [vmem:[%s2215_s0 + $0x68] sm:$0xff] }
  0x10   :  { %v119_v41 = vld [vmem:[%s2216_s2 + $0x58] sm:$0xff]  ;;  %v120_v44 = vld [vmem:[%s2216_s2 + $0x60] sm:$0xff]  ;;  %v884_v48 = vld [vmem:[%s2218_s7 + $0x10] sm:$0xff] }
  0x11   :  { %1409 = vmatmul.msk.f32.gmra.mxu2 %vm572_vm2, %v109_v11  ;;  %v885_v47 = vld [vmem:[%s2218_s7 + $0x18] sm:$0xff]  ;;  %v121_v49 = vld [vmem:[%s2216_s2 + $0x68] sm:$0xff]  ;;  %v882_v51 = vld [vmem:[%s2218_s7] sm:$0xff] }
  0x12   :  { %998 = vmatpush.msra.mxu3 %v885_v47  ;;  %v883_v50 = vld [vmem:[%s2218_s7 + $0x8] sm:$0xff]  ;;  %v90_v52 = vld [vmem:[%s2214_s1 + $0x70] sm:$0xff]  ;;  %v91_v55 = vld [vmem:[%s2214_s1 + $0x78] sm:$0xff] }
  0x13   :  { %v58_v53 = vld [vmem:[%s2215_s0 + $0x70] sm:$0xff]  ;;  %v59_v56 = vld [vmem:[%s2215_s0 + $0x78] sm:$0xff]  ;;  %v92_v60 = vld [vmem:[%s2214_s1 + $0x80] sm:$0xff] }
  0x14   :  { %999 = vmatpush.msra.mxu3 %v884_v48  ;;  %v122_v54 = vld [vmem:[%s2216_s2 + $0x70] sm:$0xff]  ;;  %v123_v57 = vld [vmem:[%s2216_s2 + $0x78] sm:$0xff]  ;;  %v60_v61 = vld [vmem:[%s2215_s0 + $0x80] sm:$0xff] }
  0x15   :  { %1345 = vmatmul.msk.f32.gmra.mxu0 %vm142_vm1, %v78_v12  ;;  %v124_v62 = vld [vmem:[%s2216_s2 + $0x80] sm:$0xff]  ;;  %v93_v2 = vld [vmem:[%s2214_s1 + $0x88] sm:$0xff] }
  0x16   :  { %1378 = vmatmul.msk.f32.gmra.mxu1 %vm142_vm1, %v46_v13  ;;  %1000 = vmatpush.msra.mxu3 %v883_v50  ;;  %v61_v3 = vld [vmem:[%s2215_s0 + $0x88] sm:$0xff]  ;;  %v1837_v4 = vld [vmem:[%s2217_s6] ss:$0 sm:$0xff]  ;;  %v94_v13 = vld [vmem:[%s2214_s1 + $0x90] sm:$0xff] }
  0x17   :  { %v125_v7 = vld [vmem:[%s2216_s2 + $0x88] sm:$0xff] }
  0x18   :  { %1001 = vmatpush.msra.mxu3 %v882_v51  ;;  %v129_v47 = vld [vmem:[%s2216_s2 + $0xa8] sm:$0xff] }
  0x19   :  { %1410 = vmatmul.msk.f32.gmra.mxu2 %vm572_vm2, %v110_v14  ;;  %v62_v14 = vld [vmem:[%s2215_s0 + $0x90] sm:$0xff] }
  0x1d   :  { %1346 = vmatmul.msk.f32.gmra.mxu0 %vm142_vm1, %v79_v15 }
  0x1e   :  { %1379 = vmatmul.msk.f32.gmra.mxu1 %vm142_vm1, %v47_v16 }
  0x21   :  { %1411 = vmatmul.msk.f32.gmra.mxu2 %vm572_vm2, %v111_v17  ;;  %v126_v17 = vld [vmem:[%s2216_s2 + $0x90] sm:$0xff] }
  0x25   :  { %1347 = vmatmul.msk.f32.gmra.mxu0 %vm142_vm1, %v80_v18 }
  0x26   :  { %1380 = vmatmul.msk.f32.gmra.mxu1 %vm142_vm1, %v48_v19 }
  0x29   :  { %1412 = vmatmul.msk.f32.gmra.mxu2 %vm572_vm2, %v112_v20 }
  0x2d   :  { %1348 = vmatmul.msk.f32.gmra.mxu0 %vm142_vm1, %v81_v21 }
  0x2e   :  { %1381 = vmatmul.msk.f32.gmra.mxu1 %vm142_vm1, %v49_v22 }
  0x31   :  { %1413 = vmatmul.msk.f32.gmra.mxu2 %vm572_vm2, %v113_v23  ;;  %v95_v23 = vld [vmem:[%s2214_s1 + $0x98] sm:$0xff] }
  0x35   :  { %1349 = vmatmul.msk.f32.gmra.mxu0 %vm142_vm1, %v82_v24  ;;  %v63_v24 = vld [vmem:[%s2215_s0 + $0x98] sm:$0xff] }
  0x36   :  { %1382 = vmatmul.msk.f32.gmra.mxu1 %vm142_vm1, %v50_v25 }
  0x39   :  { %1414 = vmatmul.msk.f32.gmra.mxu2 %vm572_vm2, %v114_v26 }
  0x3d   :  { %1350 = vmatmul.msk.f32.gmra.mxu0 %vm142_vm1, %v83_v27  ;;  %v127_v27 = vld [vmem:[%s2216_s2 + $0x98] sm:$0xff] }
  0x3e   :  { %1383 = vmatmul.msk.f32.gmra.mxu1 %vm142_vm1, %v51_v28 }
  0x41   :  { %1415 = vmatmul.msk.f32.gmra.mxu2 %vm572_vm2, %v115_v29 }
  0x45   :  { %1351 = vmatmul.msk.f32.gmra.mxu0 %vm142_vm1, %v84_v30 }
  0x46   :  { %1384 = vmatmul.msk.f32.gmra.mxu1 %vm142_vm1, %v52_v31 }
  0x49   :  { %1416 = vmatmul.msk.f32.gmra.mxu2 %vm572_vm2, %v116_v32 }
  0x4d   :  { %1352 = vmatmul.msk.f32.gmra.mxu0 %vm142_vm1, %v85_v33  ;;  %v96_v33 = vld [vmem:[%s2214_s1 + $0xa0] sm:$0xff] }
  0x4e   :  { %1385 = vmatmul.msk.f32.gmra.mxu1 %vm142_vm1, %v53_v34  ;;  %v64_v34 = vld [vmem:[%s2215_s0 + $0xa0] sm:$0xff] }
  0x51   :  { %1417 = vmatmul.msk.f32.gmra.mxu2 %vm572_vm2, %v117_v35 }
  0x55   :  { %1353 = vmatmul.msk.f32.gmra.mxu0 %vm142_vm1, %v86_v36 }
  0x56   :  { %1386 = vmatmul.msk.f32.gmra.mxu1 %vm142_vm1, %v54_v37  ;;  %v128_v37 = vld [vmem:[%s2216_s2 + $0xa0] sm:$0xff] }
  0x59   :  { %1418 = vmatmul.msk.f32.gmra.mxu2 %vm572_vm2, %v118_v38 }
  0x5d   :  { %1354 = vmatmul.msk.f32.gmra.mxu0 %vm142_vm1, %v87_v39 }
  0x5e   :  { %1387 = vmatmul.msk.f32.gmra.mxu1 %vm142_vm1, %v55_v40 }
  0x61   :  { %1419 = vmatmul.msk.f32.gmra.mxu2 %vm572_vm2, %v119_v41 }
  0x65   :  { %1355 = vmatmul.msk.f32.gmra.mxu0 %vm142_vm1, %v88_v42 }
  0x66   :  { %1388 = vmatmul.msk.f32.gmra.mxu1 %vm142_vm1, %v56_v43  ;;  %v97_v43 = vld [vmem:[%s2214_s1 + $0xa8] sm:$0xff] }
  0x69   :  { %1420 = vmatmul.msk.f32.gmra.mxu2 %vm572_vm2, %v120_v44  ;;  %v65_v44 = vld [vmem:[%s2215_s0 + $0xa8] sm:$0xff] }
  0x6d   :  { %1356 = vmatmul.msk.f32.gmra.mxu0 %vm142_vm1, %v89_v45 }
  0x6e   :  { %1389 = vmatmul.msk.f32.gmra.mxu1 %vm142_vm1, %v57_v46 }
  0x71   :  { %1421 = vmatmul.msk.f32.gmra.mxu2 %vm572_vm2, %v121_v49 }
  0x75   :  { %1357 = vmatmul.msk.f32.gmra.mxu0 %vm142_vm1, %v90_v52 }
  0x76   :  { %1390 = vmatmul.msk.f32.gmra.mxu1 %vm142_vm1, %v58_v53  ;;  %v98_v53 = vld [vmem:[%s2214_s1 + $0xb0] sm:$0xff] }
  0x79   :  { %1422 = vmatmul.msk.f32.gmra.mxu2 %vm572_vm2, %v122_v54  ;;  %v66_v54 = vld [vmem:[%s2215_s0 + $0xb0] sm:$0xff] }
  0x7d   :  { %1358 = vmatmul.msk.f32.gmra.mxu0 %vm142_vm1, %v91_v55 }
  0x7e   :  { %1391 = vmatmul.msk.f32.gmra.mxu1 %vm142_vm1, %v59_v56 }
  0x81   :  { %1423 = vmatmul.msk.f32.gmra.mxu2 %vm572_vm2, %v123_v57  ;;  %v130_v57 = vld [vmem:[%s2216_s2 + $0xb0] sm:$0xff] }
  0x82   :  { %v260_v58 = vpop.f32.mrf.mxu0 }
  0x83   :  { %v472_v59 = vpop.f32.mrf.mxu1 }
  0x84   :  { %v473_v63 = vadd.f32 %v472_v59, %v260_v58 }
  0x85   :  { %1359 = vmatmul.msk.f32.gmra.mxu0 %vm142_vm1, %v92_v60 }
  0x86   :  { %1392 = vmatmul.msk.f32.gmra.mxu1 %vm142_vm1, %v60_v61 }
  0x89   :  { %1424 = vmatmul.msk.f32.gmra.mxu2 %vm572_vm2, %v124_v62 }
  0x8a   :  { %v263_v0 = vpop.f32.mrf.mxu0 }
  0x8b   :  { %v475_v1 = vpop.f32.mrf.mxu1 }
  0x8c   :  { %v686_v5 = vpop.f32.mrf.mxu2  ;;  %v476_v9 = vadd.f32 %v475_v1, %v263_v0  ;;  %v67_v0 = vld [vmem:[%s2215_s0 + $0xb8] sm:$0xff] }
  0x8d   :  { %v782_v6 = vadd.f32 %v686_v5, %v473_v63  ;;  %1360 = vmatmul.msk.f32.gmra.mxu0 %vm142_vm1, %v93_v2  ;;  %v99_v63 = vld [vmem:[%s2214_s1 + $0xb8] sm:$0xff] }
  0x8e   :  { %1393 = vmatmul.msk.f32.gmra.mxu1 %vm142_vm1, %v61_v3  ;;  %v131_v3 = vld [vmem:[%s2216_s2 + $0xb8] sm:$0xff] }
  0x8f   :  { %v818_v8 = vadd.f32 %v1837_v4, %v782_v6 }
  0x91   :  { %1425 = vmatmul.msk.f32.gmra.mxu2 %vm572_vm2, %v125_v7  ;;  %v850_v10 = vmax.f32 %v818_v8, 0.0 }
  0x92   :  { %v266_v11 = vpop.f32.mrf.mxu0 }
  0x93   :  { %v478_v12 = vpop.f32.mrf.mxu1  ;;  %1440 = vmatmul.msk.f32.vlgmr.msra.gmra.mxu3 %vm572_vm2, %v850_v10  ;;  %v100_v10 = vld [vmem:[%s2214_s1 + $0xc0] sm:$0xff] }
  0x94   :  { %v689_v15 = vpop.f32.mrf.mxu2  ;;  %v479_v19 = vadd.f32 %v478_v12, %v266_v11  ;;  %v68_v11 = vld [vmem:[%s2215_s0 + $0xc0] sm:$0xff] }
  0x95   :  { %v783_v16 = vadd.f32 %v689_v15, %v476_v9  ;;  %1361 = vmatmul.msk.f32.gmra.mxu0 %vm142_vm1, %v94_v13 }
  0x96   :  { %1394 = vmatmul.msk.f32.gmra.mxu1 %vm142_vm1, %v62_v14  ;;  %v132_v14 = vld [vmem:[%s2216_s2 + $0xc0] sm:$0xff] }
  0x97   :  { %v819_v18 = vadd.f32 %v1837_v4, %v783_v16 }
  0x99   :  { %1426 = vmatmul.msk.f32.gmra.mxu2 %vm572_vm2, %v126_v17  ;;  %v851_v20 = vmax.f32 %v819_v18, 0.0 }
  0x9a   :  { %v269_v21 = vpop.f32.mrf.mxu0 }
  0x9b   :  { %v481_v22 = vpop.f32.mrf.mxu1  ;;  %1441 = vmatmul.msk.f32.gmra.mxu3 %vm572_vm2, %v851_v20  ;;  %v101_v20 = vld [vmem:[%s2214_s1 + $0xc8] sm:$0xff] }
  0x9c   :  { %v692_v25 = vpop.f32.mrf.mxu2  ;;  %v482_v29 = vadd.f32 %v481_v22, %v269_v21  ;;  %v69_v21 = vld [vmem:[%s2215_s0 + $0xc8] sm:$0xff] }
  0x9d   :  { %v784_v26 = vadd.f32 %v692_v25, %v479_v19  ;;  %1362 = vmatmul.msk.f32.gmra.mxu0 %vm142_vm1, %v95_v23 }
  0x9e   :  { %1395 = vmatmul.msk.f32.gmra.mxu1 %vm142_vm1, %v63_v24  ;;  %v133_v24 = vld [vmem:[%s2216_s2 + $0xc8] sm:$0xff] }
  0x9f   :  { %v820_v28 = vadd.f32 %v1837_v4, %v784_v26 }
  0xa1   :  { %1427 = vmatmul.msk.f32.gmra.mxu2 %vm572_vm2, %v127_v27  ;;  %v852_v30 = vmax.f32 %v820_v28, 0.0 }
  0xa2   :  { %v272_v31 = vpop.f32.mrf.mxu0 }
  0xa3   :  { %v484_v32 = vpop.f32.mrf.mxu1  ;;  %1442 = vmatmul.msk.f32.gmra.mxu3 %vm572_vm2, %v852_v30  ;;  %v102_v30 = vld [vmem:[%s2214_s1 + $0xd0] sm:$0xff] }
  0xa4   :  { %v695_v35 = vpop.f32.mrf.mxu2  ;;  %v485_v39 = vadd.f32 %v484_v32, %v272_v31  ;;  %v70_v31 = vld [vmem:[%s2215_s0 + $0xd0] sm:$0xff] }
  0xa5   :  { %v785_v36 = vadd.f32 %v695_v35, %v482_v29  ;;  %1363 = vmatmul.msk.f32.gmra.mxu0 %vm142_vm1, %v96_v33 }
  0xa6   :  { %1396 = vmatmul.msk.f32.gmra.mxu1 %vm142_vm1, %v64_v34  ;;  %v134_v34 = vld [vmem:[%s2216_s2 + $0xd0] sm:$0xff] }
  0xa7   :  { %v821_v38 = vadd.f32 %v1837_v4, %v785_v36 }
  0xa9   :  { %1428 = vmatmul.msk.f32.gmra.mxu2 %vm572_vm2, %v128_v37  ;;  %v853_v40 = vmax.f32 %v821_v38, 0.0 }
  0xaa   :  { %v275_v41 = vpop.f32.mrf.mxu0 }
  0xab   :  { %v487_v42 = vpop.f32.mrf.mxu1  ;;  %1443 = vmatmul.msk.f32.gmra.mxu3 %vm572_vm2, %v853_v40  ;;  %v103_v40 = vld [vmem:[%s2214_s1 + $0xd8] sm:$0xff] }
  0xac   :  { %v698_v45 = vpop.f32.mrf.mxu2  ;;  %v488_v49 = vadd.f32 %v487_v42, %v275_v41  ;;  %v71_v41 = vld [vmem:[%s2215_s0 + $0xd8] sm:$0xff] }
  0xad   :  { %v786_v46 = vadd.f32 %v698_v45, %v485_v39  ;;  %1364 = vmatmul.msk.f32.gmra.mxu0 %vm142_vm1, %v97_v43 }
  0xae   :  { %1397 = vmatmul.msk.f32.gmra.mxu1 %vm142_vm1, %v65_v44  ;;  %v135_v44 = vld [vmem:[%s2216_s2 + $0xd8] sm:$0xff] }
  0xaf   :  { %v822_v48 = vadd.f32 %v1837_v4, %v786_v46 }
  0xb1   :  { %1429 = vmatmul.msk.f32.gmra.mxu2 %vm572_vm2, %v129_v47  ;;  %v854_v50 = vmax.f32 %v822_v48, 0.0 }
  0xb2   :  { %v278_v51 = vpop.f32.mrf.mxu0 }
  0xb3   :  { %v490_v52 = vpop.f32.mrf.mxu1  ;;  %1444 = vmatmul.msk.f32.gmra.mxu3 %vm572_vm2, %v854_v50  ;;  %v104_v50 = vld [vmem:[%s2214_s1 + $0xe0] sm:$0xff] }
  0xb4   :  { %v701_v55 = vpop.f32.mrf.mxu2  ;;  %v491_v59 = vadd.f32 %v490_v52, %v278_v51  ;;  %v72_v51 = vld [vmem:[%s2215_s0 + $0xe0] sm:$0xff] }
  0xb5   :  { %v787_v56 = vadd.f32 %v701_v55, %v488_v49  ;;  %1365 = vmatmul.msk.f32.gmra.mxu0 %vm142_vm1, %v98_v53 }
  0xb6   :  { %1398 = vmatmul.msk.f32.gmra.mxu1 %vm142_vm1, %v66_v54  ;;  %v136_v54 = vld [vmem:[%s2216_s2 + $0xe0] sm:$0xff] }
  0xb7   :  { %v823_v58 = vadd.f32 %v1837_v4, %v787_v56 }
  0xb9   :  { %1430 = vmatmul.msk.f32.gmra.mxu2 %vm572_vm2, %v130_v57  ;;  %v855_v60 = vmax.f32 %v823_v58, 0.0 }
  0xba   :  { %v281_v61 = vpop.f32.mrf.mxu0 }
  0xbb   :  { %v493_v62 = vpop.f32.mrf.mxu1  ;;  %1445 = vmatmul.msk.f32.gmra.mxu3 %vm572_vm2, %v855_v60  ;;  %v105_v60 = vld [vmem:[%s2214_s1 + $0xe8] sm:$0xff] }
  0xbc   :  { %v704_v1 = vpop.f32.mrf.mxu2  ;;  %v494_v6 = vadd.f32 %v493_v62, %v281_v61  ;;  %v73_v61 = vld [vmem:[%s2215_s0 + $0xe8] sm:$0xff] }
  0xbd   :  { %v788_v2 = vadd.f32 %v704_v1, %v491_v59  ;;  %1366 = vmatmul.msk.f32.gmra.mxu0 %vm142_vm1, %v99_v63 }
  0xbe   :  { %1399 = vmatmul.msk.f32.gmra.mxu1 %vm142_vm1, %v67_v0  ;;  %v137_v0 = vld [vmem:[%s2216_s2 + $0xe8] sm:$0xff] }
  0xbf   :  { %v824_v5 = vadd.f32 %v1837_v4, %v788_v2 }
  0xc1   :  { %1431 = vmatmul.msk.f32.gmra.mxu2 %vm572_vm2, %v131_v3  ;;  %v856_v7 = vmax.f32 %v824_v5, 0.0 }
  0xc2   :  { %v284_v8 = vpop.f32.mrf.mxu0 }
  0xc3   :  { %v496_v9 = vpop.f32.mrf.mxu1  ;;  %1446 = vmatmul.msk.f32.gmra.mxu3 %vm572_vm2, %v856_v7  ;;  %v106_v7 = vld [vmem:[%s2214_s1 + $0xf0] sm:$0xff] }
  0xc4   :  { %v707_v12 = vpop.f32.mrf.mxu2  ;;  %v497_v16 = vadd.f32 %v496_v9, %v284_v8  ;;  %v74_v8 = vld [vmem:[%s2215_s0 + $0xf0] sm:$0xff] }
  0xc5   :  { %v789_v13 = vadd.f32 %v707_v12, %v494_v6  ;;  %1367 = vmatmul.msk.f32.gmra.mxu0 %vm142_vm1, %v100_v10 }
  0xc6   :  { %1400 = vmatmul.msk.f32.gmra.mxu1 %vm142_vm1, %v68_v11  ;;  %v138_v11 = vld [vmem:[%s2216_s2 + $0xf0] sm:$0xff] }
  0xc7   :  { %v825_v15 = vadd.f32 %v1837_v4, %v789_v13 }
  0xc9   :  { %1432 = vmatmul.msk.f32.gmra.mxu2 %vm572_vm2, %v132_v14  ;;  %v857_v17 = vmax.f32 %v825_v15, 0.0 }
  0xca   :  { %v287_v18 = vpop.f32.mrf.mxu0 }
  0xcb   :  { %v499_v19 = vpop.f32.mrf.mxu1  ;;  %1447 = vmatmul.msk.f32.gmra.mxu3 %vm572_vm2, %v857_v17  ;;  %v107_v17 = vld [vmem:[%s2214_s1 + $0xf8] sm:$0xff] }
  0xcc   :  { %v710_v22 = vpop.f32.mrf.mxu2  ;;  %v500_v27 = vadd.f32 %v499_v19, %v287_v18  ;;  %v75_v18 = vld [vmem:[%s2215_s0 + $0xf8] sm:$0xff] }
  0xcd   :  { %v790_v23 = vadd.f32 %v710_v22, %v497_v16  ;;  %1368 = vmatmul.msk.f32.gmra.mxu0 %vm142_vm1, %v101_v20 }
  0xce   :  { %1401 = vmatmul.msk.f32.gmra.mxu1 %vm142_vm1, %v69_v21  ;;  %v139_v21 = vld [vmem:[%s2216_s2 + $0xf8] sm:$0xff] }
  0xcf   :  { %v826_v25 = vadd.f32 %v1837_v4, %v790_v23 }
  0xd1   :  { %v858_v26 = vmax.f32 %v826_v25, 0.0  ;;  %1433 = vmatmul.msk.f32.gmra.mxu2 %vm572_vm2, %v133_v24 }
  0xd2   :  { %v290_v28 = vpop.f32.mrf.mxu0 }
  0xd3   :  { %v502_v29 = vpop.f32.mrf.mxu1  ;;  %1448 = vmatmul.msk.f32.gmra.mxu3 %vm572_vm2, %v858_v26 }
  0xd4   :  { %v713_v32 = vpop.f32.mrf.mxu2  ;;  %v503_v37 = vadd.f32 %v502_v29, %v290_v28 }
  0xd5   :  { %v791_v33 = vadd.f32 %v713_v32, %v500_v27  ;;  %1369 = vmatmul.msk.f32.gmra.mxu0 %vm142_vm1, %v102_v30 }
  0xd6   :  { %1402 = vmatmul.msk.f32.gmra.mxu1 %vm142_vm1, %v70_v31 }
  0xd7   :  { %v827_v35 = vadd.f32 %v1837_v4, %v791_v33 }
  0xd9   :  { %v859_v36 = vmax.f32 %v827_v35, 0.0  ;;  %1434 = vmatmul.msk.f32.gmra.mxu2 %vm572_vm2, %v134_v34 }
  0xda   :  { %v293_v38 = vpop.f32.mrf.mxu0 }
  0xdb   :  { %v505_v39 = vpop.f32.mrf.mxu1  ;;  %1449 = vmatmul.msk.f32.gmra.mxu3 %vm572_vm2, %v859_v36 }
  0xdc   :  { %v716_v42 = vpop.f32.mrf.mxu2  ;;  %v506_v47 = vadd.f32 %v505_v39, %v293_v38 }
  0xdd   :  { %v792_v43 = vadd.f32 %v716_v42, %v503_v37  ;;  %1370 = vmatmul.msk.f32.gmra.mxu0 %vm142_vm1, %v103_v40 }
  0xde   :  { %1403 = vmatmul.msk.f32.gmra.mxu1 %vm142_vm1, %v71_v41 }
  0xdf   :  { %v828_v45 = vadd.f32 %v1837_v4, %v792_v43 }
  0xe1   :  { %v860_v46 = vmax.f32 %v828_v45, 0.0  ;;  %1435 = vmatmul.msk.f32.gmra.mxu2 %vm572_vm2, %v135_v44 }
  0xe2   :  { %v296_v48 = vpop.f32.mrf.mxu0 }
  0xe3   :  { %v508_v49 = vpop.f32.mrf.mxu1  ;;  %1450 = vmatmul.msk.f32.gmra.mxu3 %vm572_vm2, %v860_v46 }
  0xe4   :  { %v719_v52 = vpop.f32.mrf.mxu2  ;;  %v509_v57 = vadd.f32 %v508_v49, %v296_v48 }
  0xe5   :  { %v793_v53 = vadd.f32 %v719_v52, %v506_v47  ;;  %1371 = vmatmul.msk.f32.gmra.mxu0 %vm142_vm1, %v104_v50 }
  0xe6   :  { %1404 = vmatmul.msk.f32.gmra.mxu1 %vm142_vm1, %v72_v51 }
  0xe7   :  { %v829_v55 = vadd.f32 %v1837_v4, %v793_v53 }
  0xe9   :  { %v861_v56 = vmax.f32 %v829_v55, 0.0  ;;  %1436 = vmatmul.msk.f32.gmra.mxu2 %vm572_vm2, %v136_v54 }
  0xea   :  { %v299_v58 = vpop.f32.mrf.mxu0 }
  0xeb   :  { %v511_v59 = vpop.f32.mrf.mxu1  ;;  %1451 = vmatmul.msk.f32.gmra.mxu3 %vm572_vm2, %v861_v56 }
  0xec   :  { %v722_v62 = vpop.f32.mrf.mxu2  ;;  %v512_v3 = vadd.f32 %v511_v59, %v299_v58 }
  0xed   :  { %v794_v63 = vadd.f32 %v722_v62, %v509_v57  ;;  %1372 = vmatmul.msk.f32.gmra.mxu0 %vm142_vm1, %v105_v60 }
  0xee   :  { %1405 = vmatmul.msk.f32.gmra.mxu1 %vm142_vm1, %v73_v61 }
  0xef   :  { %v830_v1 = vadd.f32 %v1837_v4, %v794_v63 }
  0xf1   :  { %v862_v2 = vmax.f32 %v830_v1, 0.0  ;;  %1437 = vmatmul.msk.f32.gmra.mxu2 %vm572_vm2, %v137_v0 }
  0xf2   :  { %v302_v5 = vpop.f32.mrf.mxu0 }
  0xf3   :  { %v514_v6 = vpop.f32.mrf.mxu1  ;;  %1452 = vmatmul.msk.f32.gmra.mxu3 %vm572_vm2, %v862_v2 }
  0xf4   :  { %v725_v9 = vpop.f32.mrf.mxu2  ;;  %v515_v14 = vadd.f32 %v514_v6, %v302_v5 }
  0xf5   :  { %v795_v10 = vadd.f32 %v725_v9, %v512_v3  ;;  %1373 = vmatmul.msk.f32.gmra.mxu0 %vm142_vm1, %v106_v7 }
  0xf6   :  { %1406 = vmatmul.msk.f32.gmra.mxu1 %vm142_vm1, %v74_v8 }
  0xf7   :  { %v831_v12 = vadd.f32 %v1837_v4, %v795_v10 }
  0xf9   :  { %v863_v13 = vmax.f32 %v831_v12, 0.0  ;;  %1438 = vmatmul.msk.f32.gmra.mxu2 %vm572_vm2, %v138_v11 }
  0xfa   :  { %v305_v15 = vpop.f32.mrf.mxu0 }
  0xfb   :  { %v517_v16 = vpop.f32.mrf.mxu1  ;;  %1453 = vmatmul.msk.f32.gmra.mxu3 %vm572_vm2, %v863_v13 }
  0xfc   :  { %v728_v19 = vpop.f32.mrf.mxu2  ;;  %v518_v24 = vadd.f32 %v517_v16, %v305_v15 }
  0xfd   :  { %v796_v20 = vadd.f32 %v728_v19, %v515_v14  ;;  %1374 = vmatmul.msk.f32.gmra.mxu0 %vm142_vm1, %v107_v17 }
  0xfe   :  { %1407 = vmatmul.msk.f32.gmra.mxu1 %vm142_vm1, %v75_v18 }
  0xff   :  { %v832_v22 = vadd.f32 %v1837_v4, %v796_v20 }
 0x101   :  { %v864_v23 = vmax.f32 %v832_v22, 0.0  ;;  %1439 = vmatmul.msk.f32.gmra.mxu2 %vm572_vm2, %v139_v21 }
 0x102   :  { %v308_v25 = vpop.f32.mrf.mxu0 }
 0x103   :  { %v520_v26 = vpop.f32.mrf.mxu1  ;;  %1454 = vmatmul.msk.f32.gmra.mxu3 %vm572_vm2, %v864_v23 }
 0x104   :  { %v731_v27 = vpop.f32.mrf.mxu2  ;;  %v521_v31 = vadd.f32 %v520_v26, %v308_v25 }
 0x105   :  { %v797_v28 = vadd.f32 %v731_v27, %v518_v24 }
 0x107   :  { %v833_v29 = vadd.f32 %v1837_v4, %v797_v28 }
 0x109   :  { %v865_v30 = vmax.f32 %v833_v29, 0.0 }
 0x10a   :  { %v311_v32 = vpop.f32.mrf.mxu0 }
 0x10b   :  { %v523_v33 = vpop.f32.mrf.mxu1  ;;  %1455 = vmatmul.msk.f32.gmra.mxu3 %vm572_vm2, %v865_v30 }
 0x10c   :  { %v734_v34 = vpop.f32.mrf.mxu2  ;;  %v524_v38 = vadd.f32 %v523_v33, %v311_v32 }
 0x10d   :  { %v798_v35 = vadd.f32 %v734_v34, %v521_v31 }
 0x10f   :  { %v834_v36 = vadd.f32 %v1837_v4, %v798_v35 }
 0x111   :  { %v866_v37 = vmax.f32 %v834_v36, 0.0 }
 0x112   :  { %v314_v39 = vpop.f32.mrf.mxu0 }
 0x113   :  { %v526_v40 = vpop.f32.mrf.mxu1  ;;  %1456 = vmatmul.msk.f32.gmra.mxu3 %vm572_vm2, %v866_v37 }
 0x114   :  { %v737_v41 = vpop.f32.mrf.mxu2  ;;  %v527_v46 = vadd.f32 %v526_v40, %v314_v39 }
 0x115   :  { %v799_v42 = vadd.f32 %v737_v41, %v524_v38 }
 0x116   :  { %v2047_v43 = vpop.f32.mrf.mxu3 }
 0x117   :  { %v835_v44 = vadd.f32 %v1837_v4, %v799_v42 }
 0x119   :  { %v867_v45 = vmax.f32 %v835_v44, 0.0 }
 0x11a   :  { %v317_v47 = vpop.f32.mrf.mxu0 }
 0x11b   :  { %v529_v48 = vpop.f32.mrf.mxu1  ;;  %1457 = vmatmul.msk.f32.gmra.mxu3 %vm572_vm2, %v867_v45 }
 0x11c   :  { %v740_v49 = vpop.f32.mrf.mxu2  ;;  %v530_v54 = vadd.f32 %v529_v48, %v317_v47 }
 0x11d   :  { %v800_v50 = vadd.f32 %v740_v49, %v527_v46 }
 0x11e   :  { %v2051_v51 = vpop.f32.mrf.mxu3 }
 0x11f   :  { %v836_v52 = vadd.f32 %v1837_v4, %v800_v50 }
 0x121   :  { %v868_v53 = vmax.f32 %v836_v52, 0.0 }
 0x122   :  { %v320_v55 = vpop.f32.mrf.mxu0 }
 0x123   :  { %v532_v56 = vpop.f32.mrf.mxu1  ;;  %1458 = vmatmul.msk.f32.gmra.mxu3 %vm572_vm2, %v868_v53 }
 0x124   :  { %v743_v57 = vpop.f32.mrf.mxu2  ;;  %v533_v62 = vadd.f32 %v532_v56, %v320_v55 }
 0x125   :  { %v801_v58 = vadd.f32 %v743_v57, %v530_v54 }
 0x126   :  { %v2055_v59 = vpop.f32.mrf.mxu3 }
 0x127   :  { %v837_v60 = vadd.f32 %v1837_v4, %v801_v58 }
 0x129   :  { %v869_v61 = vmax.f32 %v837_v60, 0.0 }
 0x12a   :  { %v323_v63 = vpop.f32.mrf.mxu0 }
 0x12b   :  { %v535_v0 = vpop.f32.mrf.mxu1  ;;  %1459 = vmatmul.msk.f32.gmra.mxu3 %vm572_vm2, %v869_v61 }
 0x12c   :  { %v746_v1 = vpop.f32.mrf.mxu2  ;;  %v536_v7 = vadd.f32 %v535_v0, %v323_v63 }
 0x12d   :  { %v802_v2 = vadd.f32 %v746_v1, %v533_v62 }
 0x12e   :  { %v2059_v3 = vpop.f32.mrf.mxu3 }
 0x12f   :  { %v838_v5 = vadd.f32 %v1837_v4, %v802_v2 }
 0x131   :  { %v870_v6 = vmax.f32 %v838_v5, 0.0 }
 0x132   :  { %v326_v8 = vpop.f32.mrf.mxu0 }
 0x133   :  { %v538_v9 = vpop.f32.mrf.mxu1  ;;  %1460 = vmatmul.msk.f32.gmra.mxu3 %vm572_vm2, %v870_v6 }
 0x134   :  { %v749_v10 = vpop.f32.mrf.mxu2  ;;  %v539_v15 = vadd.f32 %v538_v9, %v326_v8 }
 0x135   :  { %v803_v11 = vadd.f32 %v749_v10, %v536_v7 }
 0x136   :  { %v2063_v12 = vpop.f32.mrf.mxu3 }
 0x137   :  { %v839_v13 = vadd.f32 %v1837_v4, %v803_v11 }
 0x139   :  { %v871_v14 = vmax.f32 %v839_v13, 0.0 }
 0x13a   :  { %v329_v16 = vpop.f32.mrf.mxu0 }
 0x13b   :  { %v541_v17 = vpop.f32.mrf.mxu1  ;;  %1461 = vmatmul.msk.f32.gmra.mxu3 %vm572_vm2, %v871_v14 }
 0x13c   :  { %v752_v18 = vpop.f32.mrf.mxu2  ;;  %v542_v23 = vadd.f32 %v541_v17, %v329_v16 }
 0x13d   :  { %v804_v19 = vadd.f32 %v752_v18, %v539_v15 }
 0x13e   :  { %v2067_v20 = vpop.f32.mrf.mxu3 }
 0x13f   :  { %v840_v21 = vadd.f32 %v1837_v4, %v804_v19 }
 0x141   :  { %v872_v22 = vmax.f32 %v840_v21, 0.0 }
 0x142   :  { %v332_v24 = vpop.f32.mrf.mxu0 }
 0x143   :  { %v544_v25 = vpop.f32.mrf.mxu1  ;;  %1462 = vmatmul.msk.f32.gmra.mxu3 %vm572_vm2, %v872_v22 }
 0x144   :  { %v755_v26 = vpop.f32.mrf.mxu2  ;;  %v545_v31 = vadd.f32 %v544_v25, %v332_v24 }
 0x145   :  { %v805_v27 = vadd.f32 %v755_v26, %v542_v23 }
 0x146   :  { %v2071_v28 = vpop.f32.mrf.mxu3 }
 0x147   :  { %v841_v29 = vadd.f32 %v1837_v4, %v805_v27 }
 0x149   :  { %v873_v30 = vmax.f32 %v841_v29, 0.0 }
 0x14a   :  { %v335_v32 = vpop.f32.mrf.mxu0 }
 0x14b   :  { %v547_v33 = vpop.f32.mrf.mxu1  ;;  %1463 = vmatmul.msk.f32.gmra.mxu3 %vm572_vm2, %v873_v30 }
 0x14c   :  { %v758_v34 = vpop.f32.mrf.mxu2  ;;  %v548_v39 = vadd.f32 %v547_v33, %v335_v32 }
 0x14d   :  { %v806_v35 = vadd.f32 %v758_v34, %v545_v31 }
 0x14e   :  { %v2075_v36 = vpop.f32.mrf.mxu3 }
 0x14f   :  { %v842_v37 = vadd.f32 %v1837_v4, %v806_v35 }
 0x151   :  { %v874_v38 = vmax.f32 %v842_v37, 0.0 }
 0x152   :  { %v338_v40 = vpop.f32.mrf.mxu0 }
 0x153   :  { %v550_v41 = vpop.f32.mrf.mxu1  ;;  %1464 = vmatmul.msk.f32.gmra.mxu3 %vm572_vm2, %v874_v38  ;;  %v2100_v38 = vld [vmem:[%s2219_s8] ss:$0 sm:$0xff] }
 0x154   :  { %v761_v42 = vpop.f32.mrf.mxu2  ;;  %v551_v48 = vadd.f32 %v550_v41, %v338_v40 }
 0x155   :  { %v807_v44 = vadd.f32 %v761_v42, %v548_v39 }
 0x156   :  { %v2079_v45 = vpop.f32.mrf.mxu3 }
 0x157   :  { %v843_v46 = vadd.f32 %v1837_v4, %v807_v44 }
 0x159   :  { %v875_v47 = vmax.f32 %v843_v46, 0.0 }
 0x15a   :  { %v341_v49 = vpop.f32.mrf.mxu0 }
 0x15b   :  { %v553_v50 = vpop.f32.mrf.mxu1  ;;  %1465 = vmatmul.msk.f32.gmra.mxu3 %vm572_vm2, %v875_v47 }
 0x15c   :  { %v764_v52 = vpop.f32.mrf.mxu2  ;;  %v554_v57 = vadd.f32 %v553_v50, %v341_v49 }
 0x15d   :  { %v808_v53 = vadd.f32 %v764_v52, %v551_v48 }
 0x15e   :  { %v2083_v54 = vpop.f32.mrf.mxu3 }
 0x15f   :  { %v844_v55 = vadd.f32 %v1837_v4, %v808_v53 }
 0x161   :  { %v876_v56 = vmax.f32 %v844_v55, 0.0 }
 0x162   :  { %v344_v58 = vpop.f32.mrf.mxu0 }
 0x163   :  { %v556_v60 = vpop.f32.mrf.mxu1  ;;  %1466 = vmatmul.msk.f32.gmra.mxu3 %vm572_vm2, %v876_v56  ;;  %v1031_v56 = vadd.f32 %v2100_v38, %v2083_v54  ;;  %v1022_v54 = vadd.f32 %v2100_v38, %v2071_v28  ;;  %v1013_v28 = vadd.f32 %v2100_v38, %v2059_v3  ;;  %v1004_v3 = vadd.f32 %v2100_v38, %v2047_v43 }
 0x164   :  { %v767_v61 = vpop.f32.mrf.mxu2  ;;  %v557_v2 = vadd.f32 %v556_v60, %v344_v58  ;;  %v1028_v60 = vadd.f32 %v2100_v38, %v2079_v45  ;;  %v1019_v45 = vadd.f32 %v2100_v38, %v2067_v20  ;;  %v1010_v20 = vadd.f32 %v2100_v38, %v2055_v59 }
 0x165   :  { %v809_v62 = vadd.f32 %v767_v61, %v554_v57  ;;  %v1108_v61 = vmax.f32 %v1031_v56, 0.0 }
 0x166   :  { %v1033_v63 = vpop.f32.mrf.mxu3 }
 0x167   :  { %v845_v0 = vadd.f32 %v1837_v4, %v809_v62  ;;  %v1034_v53 = vadd.f32 %v2100_v38, %v1033_v63  ;;  %v1025_v62 = vadd.f32 %v2100_v38, %v2075_v36  ;;  %v1107_v63 = vmax.f32 %v1028_v60, 0.0 }
 0x168   :  { %v1016_v36 = vadd.f32 %v2100_v38, %v2063_v12  ;;  %v1007_v12 = vadd.f32 %v2100_v38, %v2051_v51 }
 0x169   :  { %v877_v1 = vmax.f32 %v845_v0, 0.0  ;;  %v1109_v57 = vmax.f32 %v1034_v53, 0.0 }
 0x16a   :  { %v347_v5 = vpop.f32.mrf.mxu0 }
 0x16b   :  { %v559_v6 = vpop.f32.mrf.mxu1  ;;  %1467 = vmatmul.msk.f32.gmra.mxu3 %vm572_vm2, %v877_v1  ;;  %v1106_v1 = vmax.f32 %v1025_v62, 0.0 }
 0x16c   :  { %v770_v7 = vpop.f32.mrf.mxu2  ;;  %v560_v13 = vadd.f32 %v559_v6, %v347_v5  ;;  %v1104_v6 = vmax.f32 %v1019_v45, 0.0 }
 0x16d   :  { %v810_v8 = vadd.f32 %v770_v7, %v557_v2  ;;  %v1105_v2 = vmax.f32 %v1022_v54, 0.0  ;;  %v1103_v7 = vmax.f32 %v1016_v36, 0.0 }
 0x16e   :  { %v1036_v9 = vpop.f32.mrf.mxu3 }
 0x16f   :  { %v846_v10 = vadd.f32 %v1837_v4, %v810_v8  ;;  %v1037_v49 = vadd.f32 %v2100_v38, %v1036_v9  ;;  %v1102_v9 = vmax.f32 %v1013_v28, 0.0 }
 0x171   :  { %v878_v11 = vmax.f32 %v846_v10, 0.0  ;;  %v1110_v55 = vmax.f32 %v1037_v49, 0.0  ;;  %v1101_v10 = vmax.f32 %v1010_v20, 0.0  ;;  %v1315_v49 = vld [vmem:[%s2222_s11] sm:$0xf] }
 0x172   :  { %v350_v14 = vpop.f32.mrf.mxu0 }
 0x173   :  { %1468 = vmatmul.msk.f32.gmra.mxu3 %vm572_vm2, %v878_v11  ;;  %v562_v16 = vpop.f32.mrf.mxu1 }
 0x174   :  { %v773_v15 = vpop.f32.mrf.mxu2  ;;  %v563_v22 = vadd.f32 %v562_v16, %v350_v14  ;;  %v1099_v14 = vmax.f32 %v1004_v3, 0.0 }
 0x175   :  { %v811_v17 = vadd.f32 %v773_v15, %v560_v13  ;;  %v1100_v13 = vmax.f32 %v1007_v12, 0.0 }
 0x176   :  { %v1039_v18 = vpop.f32.mrf.mxu3 }
 0x177   :  { %v847_v19 = vadd.f32 %v1837_v4, %v811_v17  ;;  %v1040_v47 = vadd.f32 %v2100_v38, %v1039_v18 }
 0x179   :  { %v879_v21 = vmax.f32 %v847_v19, 0.0  ;;  %v1111_v50 = vmax.f32 %v1040_v47, 0.0 }
 0x17a   :  { %v353_v25 = vpop.f32.mrf.mxu0 }
 0x17b   :  { %1469 = vmatmul.msk.f32.gmra.mxu3 %vm572_vm2, %v879_v21  ;;  %v565_v27 = vpop.f32.mrf.mxu1 }
 0x17c   :  { %v776_v23 = vpop.f32.mrf.mxu2  ;;  %v566_v31 = vadd.f32 %v565_v27, %v353_v25  ;;  %v1131_v25 = vld [vmem:[%s2220_s9] sm:$0xf] }
 0x17d   :  { %v812_v24 = vadd.f32 %v776_v23, %v563_v22 }
 0x17e   :  { %v1042_v26 = vpop.f32.mrf.mxu3 }
 0x17f   :  { %v848_v29 = vadd.f32 %v1837_v4, %v812_v24  ;;  %v1043_v44 = vadd.f32 %v2100_v38, %v1042_v26 }
 0x181   :  { %v880_v30 = vmax.f32 %v848_v29, 0.0  ;;  %v1112_v48 = vmax.f32 %v1043_v44, 0.0 }
 0x183   :  { %1470 = vmatmul.msk.f32.gmra.mxu3 %vm572_vm2, %v880_v30 }
 0x184   :  { %v779_v32 = vpop.f32.mrf.mxu2 }
 0x185   :  { %v813_v33 = vadd.f32 %v779_v32, %v566_v31 }
 0x186   :  { %v1045_v34 = vpop.f32.mrf.mxu3 }
 0x187   :  { %v849_v35 = vadd.f32 %v1837_v4, %v813_v33  ;;  %v1046_v41 = vadd.f32 %v2100_v38, %v1045_v34  ;;  %v1521_v33 = vmov 0   ;;  %v1132_v34 = vld [vmem:[%s2221_s10] sm:$0xf] }
 0x188   :  { %1509 = vset.pattern.permute.xlu0 %v1521_v33  ;;  %1510 = vset.pattern.permute.xlu1 %v1521_v33 }
 0x189   :  { %v881_v37 = vmax.f32 %v849_v35, 0.0  ;;  %v1113_v46 = vmax.f32 %v1046_v41, 0.0  ;;  %1135 = vperm.xlu0 %1509, %v1132_v34  }
 0x18b   :  { %1471 = vmatmul.msk.f32.gmra.mxu3 %vm572_vm2, %v881_v37 }
 0x18e   :  { %v1048_v39 = vpop.f32.mrf.mxu3 }
 0x18f   :  { %v1049_v40 = vadd.f32 %v2100_v38, %v1048_v39 }
 0x191   :  { %v1114_v42 = vmax.f32 %v1049_v40, 0.0  ;;  %1318 = vperm.xlu0 %1509, %v1315_v49  }
 0x193   :  { %1472 = vmatpush.xpose.msk.msrb.mxu0 %vm572_vm2, %v1114_v42 }
 0x196   :  { %v2106_v4 = vpop.f32.mrf.mxu3 }
 0x197   :  { %1473 = vmatpush.xpose.msk.msrb.mxu0 %vm572_vm2, %v1113_v46  ;;  %v1052_v45 = vadd.f32 %v2100_v38, %v2106_v4 }
 0x19b   :  { %1474 = vmatpush.xpose.msk.msrb.mxu0 %vm572_vm2, %v1112_v48 }
 0x19e   :  { %v2112_v52 = vpop.f32.mrf.mxu3 }
 0x19f   :  { %1475 = vmatpush.xpose.msk.msrb.mxu0 %vm572_vm2, %v1111_v50  ;;  %v1323_v50 = vld [vmem:[%s2223_s12] sm:$0xf]  ;;  %v1055_v54 = vadd.f32 %v2100_v38, %v2112_v52 }
 0x1a0   :  { %1326 = vperm.xlu1 %1510, %v1323_v50  }
 0x1a3   :  { %1476 = vmatpush.xpose.msk.msrb.mxu0 %vm572_vm2, %v1110_v55 }
 0x1a6   :  { %v2119_v58 = vpop.f32.mrf.mxu3 }
 0x1a7   :  { %1477 = vmatpush.xpose.msk.msrb.mxu0 %vm572_vm2, %v1109_v57  ;;  %v1058_v62 = vadd.f32 %v2100_v38, %v2119_v58 }
 0x1ab   :  { %1478 = vmatpush.xpose.msk.msrb.mxu0 %vm572_vm2, %v1108_v61 }
 0x1ae   :  { %v2127_v0 = vpop.f32.mrf.mxu3 }
 0x1af   :  { %1479 = vmatpush.xpose.msk.msrb.mxu0 %vm572_vm2, %v1107_v63  ;;  %v1061_v60 = vadd.f32 %v2100_v38, %v2127_v0  ;;  %v1115_v0 = vmax.f32 %v1052_v45, 0.0 }
 0x1b1   :  { %v1118_v63 = vmax.f32 %v1061_v60, 0.0 }
 0x1b3   :  { %1480 = vmatpush.xpose.msk.msrb.mxu0 %vm572_vm2, %v1106_v1  ;;  %v1117_v1 = vmax.f32 %v1058_v62, 0.0 }
 0x1b6   :  { %v2135_v5 = vpop.f32.mrf.mxu3 }
 0x1b7   :  { %1481 = vmatpush.xpose.msk.msrb.mxu0 %vm572_vm2, %v1105_v2  ;;  %v1064_v56 = vadd.f32 %v2100_v38, %v2135_v5  ;;  %v1116_v2 = vmax.f32 %v1055_v54, 0.0 }
 0x1b9   :  { %v1119_v61 = vmax.f32 %v1064_v56, 0.0 }
 0x1bb   :  { %1482 = vmatpush.xpose.msk.msrb.mxu0 %vm572_vm2, %v1104_v6 }
 0x1be   :  { %v2143_v8 = vpop.f32.mrf.mxu3 }
 0x1bf   :  { %1483 = vmatpush.xpose.msk.msrb.mxu0 %vm572_vm2, %v1103_v7  ;;  %v1067_v53 = vadd.f32 %v2100_v38, %v2143_v8 }
 0x1c1   :  { %v1120_v57 = vmax.f32 %v1067_v53, 0.0 }
 0x1c3   :  { %1484 = vmatpush.xpose.msk.msrb.mxu0 %vm572_vm2, %v1102_v9 }
 0x1c6   :  { %v1069_v11 = vpop.f32.mrf.mxu3 }
 0x1c7   :  { %1485 = vmatpush.xpose.msk.msrb.mxu0 %vm572_vm2, %v1101_v10  ;;  %v1070_v47 = vadd.f32 %v2100_v38, %v1069_v11 }
 0x1c9   :  { %v1121_v55 = vmax.f32 %v1070_v47, 0.0 }
 0x1cb   :  { %1486 = vmatpush.xpose.msk.msrb.mxu0 %vm572_vm2, %v1100_v13 }
 0x1ce   :  { %v1072_v15 = vpop.f32.mrf.mxu3 }
 0x1cf   :  { %1487 = vmatpush.xpose.msk.msrb.mxu0 %vm572_vm2, %v1099_v14  ;;  %v1073_v44 = vadd.f32 %v2100_v38, %v1072_v15 }
 0x1d1   :  { %v1122_v48 = vmax.f32 %v1073_v44, 0.0 }
 0x1d2   :  { %1488 = vmatmul.msk.f32.vlgmr.msrb.gmra.mxu0 %vm572_vm2, %v1131_v25 }
 0x1d6   :  { %v1075_v59 = vpop.f32.mrf.mxu3 }
 0x1d7   :  { %v1076_v41 = vadd.f32 %v2100_v38, %v1075_v59 }
 0x1d9   :  { %v1123_v46 = vmax.f32 %v1076_v41, 0.0 }
 0x1de   :  { %v1078_v16 = vpop.f32.mrf.mxu3 }
 0x1df   :  { %v1079_v39 = vadd.f32 %v2100_v38, %v1078_v16 }
 0x1e1   :  { %v1124_v42 = vmax.f32 %v1079_v39, 0.0 }
 0x1e6   :  { %v1081_v17 = vpop.f32.mrf.mxu3 }
 0x1e7   :  { %v1082_v35 = vadd.f32 %v2100_v38, %v1081_v17 }
 0x1e9   :  { %v1125_v40 = vmax.f32 %v1082_v35, 0.0 }
 0x1ee   :  { %v1084_v18 = vpop.f32.mrf.mxu3 }
 0x1ef   :  { %v1085_v31 = vadd.f32 %v2100_v38, %v1084_v18 }
 0x1f1   :  { %v1126_v37 = vmax.f32 %v1085_v31, 0.0 }
 0x1f6   :  { %v1087_v19 = vpop.f32.mrf.mxu3 }
 0x1f7   :  { %v1088_v29 = vadd.f32 %v2100_v38, %v1087_v19 }
 0x1f9   :  { %v1127_v32 = vmax.f32 %v1088_v29, 0.0 }
 0x1fb   :  { %v1136_v58 = vpop.permute.xlu0 %1135 }
 0x1fe   :  { %v1090_v51 = vpop.f32.mrf.mxu3 }
 0x1ff   :  { %v1091_v26 = vadd.f32 %v2100_v38, %v1090_v51 }
 0x201   :  { %v1128_v30 = vmax.f32 %v1091_v26, 0.0 }
 0x206   :  { %v1093_v21 = vpop.f32.mrf.mxu3 }
 0x207   :  { %v1094_v24 = vadd.f32 %v2100_v38, %v1093_v21 }
 0x209   :  { %v1129_v27 = vmax.f32 %v1094_v24, 0.0 }
 0x20e   :  { %v1096_v22 = vpop.f32.mrf.mxu3 }
 0x20f   :  { %v1097_v23 = vadd.f32 %v2100_v38, %v1096_v22 }
 0x211   :  { %v1130_v43 = vmax.f32 %v1097_v23, 0.0  ;;  %v1319_v23 = vpop.permute.xlu0 %1318 }
 0x213   :  { %1489 = vmatpush.xpose.msk.msrb.mxu1 %vm572_vm2, %v1130_v43 }
 0x217   :  { %1490 = vmatpush.xpose.msk.msrb.mxu1 %vm572_vm2, %v1129_v27 }
 0x21b   :  { %1491 = vmatpush.xpose.msk.msrb.mxu1 %vm572_vm2, %v1128_v30  ;;  %v1327_v30 = vpop.permute.xlu1 %1326 }
 0x21f   :  { %1492 = vmatpush.xpose.msk.msrb.mxu1 %vm572_vm2, %v1127_v32 }
 0x223   :  { %1493 = vmatpush.xpose.msk.msrb.mxu1 %vm572_vm2, %v1126_v37 }
 0x227   :  { %1494 = vmatpush.xpose.msk.msrb.mxu1 %vm572_vm2, %v1125_v40 }
 0x22b   :  { %1495 = vmatpush.xpose.msk.msrb.mxu1 %vm572_vm2, %v1124_v42 }
 0x22f   :  { %1496 = vmatpush.xpose.msk.msrb.mxu1 %vm572_vm2, %v1123_v46 }
 0x233   :  { %1497 = vmatpush.xpose.msk.msrb.mxu1 %vm572_vm2, %v1122_v48 }
 0x237   :  { %1498 = vmatpush.xpose.msk.msrb.mxu1 %vm572_vm2, %v1121_v55 }
 0x23b   :  { %1499 = vmatpush.xpose.msk.msrb.mxu1 %vm572_vm2, %v1120_v57 }
 0x23f   :  { %1500 = vmatpush.xpose.msk.msrb.mxu1 %vm572_vm2, %v1119_v61 }
 0x243   :  { %1501 = vmatpush.xpose.msk.msrb.mxu1 %vm572_vm2, %v1118_v63 }
 0x247   :  { %1502 = vmatpush.xpose.msk.msrb.mxu1 %vm572_vm2, %v1117_v1 }
 0x24b   :  { %1503 = vmatpush.xpose.msk.msrb.mxu1 %vm572_vm2, %v1116_v2 }
 0x24f   :  { %1504 = vmatpush.xpose.msk.msrb.mxu1 %vm572_vm2, %v1115_v0  ;;  %v1254_v5 = vpop.f32.mrf.mxu0 }
 0x250   :  { %v1255_v36 = vadd.f32 %v1254_v5, %v1136_v58 }
 0x252   :  { %1505 = vmatmul.msk.f32.vlgmr.msrb.gmra.mxu1 %vm572_vm2, %v1131_v25  ;;  %v1506_v6 = vmul.f32 -1.442695, %v1255_v36 }
 0x254   :  { %1513 = vpow2.f32 %v1506_v6 }
 0x25a   :  { %v1514_v52 = vpop.eup %1513 }
 0x25b   :  { %v1283_v28 = vadd.f32 1.0, %v1514_v52 }
 0x25d   :  { %1515 = vrcp.f32 %v1283_v28  ;;  %vm1290_vm3 = vweird.f32 %v1283_v28  ;;  %v1296_v14 = vand.u32 2147483648, %v1283_v28  ;;  %v1294_v15 = vand.u32 2147483647, %v1283_v28 }
 0x25f   :  { %v1297_v18 = vor.u32 1.1754944e-38, %v1296_v14  ;;  %vm1295_vm6 = vcmp.eq.f32.partialorder %v1294_v15, 8.507059e+37 }
 0x263   :  { %v1516_v38 = vpop.eup %1515 }
 0x264   :  { %v1286_v4 = vmul.f32 %v1516_v38, %v1283_v28  ;;  %vm1291_vm4 = vweird.f32 %v1516_v38 }
 0x265   :  { %vm1292_vm5 = vmor %vm1290_vm3, %vm1291_vm4 }
 0x266   :  { %v1287_v10 = vsub.f32 1.0, %v1286_v4 }
 0x268   :  { %v1288_v11 = vmul.f32 %v1516_v38, %v1287_v10 }
 0x26a   :  { %v1289_v13 = vadd.f32 %v1516_v38, %v1288_v11 }
 0x26c   :  { %v1293_v17 = vsel %vm1292_vm5, %v1516_v38, %v1289_v13 }
 0x26d   :  { %v1298_v24 = vsel %vm1295_vm6, %v1297_v18, %v1293_v17 }
 0x26e   :  { %v1321_v27 = vmul.f32 %v1319_v23, %v1298_v24 }
 0x270   :  { %v1329_v32 = vadd.f32 %v1327_v30, %v1321_v27 }
 0x2cf   :  { %v1274_v7 = vpop.f32.mrf.mxu1 }
 0x2d0   :  { %v1275_v8 = vadd.f32 %v1274_v7, %v1136_v58 }
 0x2d2   :  { %v1507_v20 = vmul.f32 -1.442695, %v1275_v8 }
 0x2d4   :  { %1517 = vpow2.f32 %v1507_v20 }
 0x2da   :  { %v1518_v9 = vpop.eup %1517 }
 0x2db   :  { %v1284_v12 = vadd.f32 1.0, %v1518_v9 }
 0x2dd   :  { %1519 = vrcp.f32 %v1284_v12  ;;  %v1311_v19 = vand.u32 2147483648, %v1284_v12  ;;  %v1309_v21 = vand.u32 2147483647, %v1284_v12  ;;  %vm1305_vm8 = vweird.f32 %v1284_v12 }
 0x2df   :  { %v1312_v43 = vor.u32 1.1754944e-38, %v1311_v19  ;;  %vm1310_vm10 = vcmp.eq.f32.partialorder %v1309_v21, 8.507059e+37 }
 0x2e3   :  { %v1520_v3 = vpop.eup %1519 }
 0x2e4   :  { %v1301_v59 = vmul.f32 %v1520_v3, %v1284_v12  ;;  %vm1306_vm7 = vweird.f32 %v1520_v3 }
 0x2e5   :  { %vm1307_vm9 = vmor %vm1305_vm8, %vm1306_vm7 }
 0x2e6   :  { %v1302_v16 = vsub.f32 1.0, %v1301_v59 }
 0x2e8   :  { %v1303_v51 = vmul.f32 %v1520_v3, %v1302_v16 }
 0x2ea   :  { %v1304_v22 = vadd.f32 %v1520_v3, %v1303_v51 }
 0x2ec   :  { %v1308_v25 = vsel %vm1307_vm9, %v1520_v3, %v1304_v22 }
 0x2ed   :  { %v1313_v26 = vsel %vm1310_vm10, %v1312_v43, %v1308_v25 }
 0x2ee   :  { %v1322_v29 = vmul.f32 %v1319_v23, %v1313_v26 }
 0x2f0   :  { %v1330_v31 = vadd.f32 %v1327_v30, %v1322_v29 }
 0x2f2   :  { %v1333_v33 = vrot.slane %v1330_v31, 4 }
 0x2f4   :  { %v1335_v34 = vsel %vm1334_vm11, %v1329_v32, %v1333_v33 }
 0x2f5   :  { %1337 = vst [vmem:[%s2224_s13] sm:$0xff] %v1335_v34 }

</bundles_post_ra>
